<compile_context>
chip_gen: v7x
topology: tpu7x:2x2x1
jax: 0.10.0
libtpu: 0.0.40
codegen_flags: <defaults>
</compile_context>

<pallas_src>
import jax
import jax.numpy as jnp
import numpy as np
from jax.experimental import pallas as pl
from jax.experimental.pallas import tpu as pltpu


ACTS = {
    "tanh": jnp.tanh,
    "elu": jax.nn.elu,
    "relu": jax.nn.relu,
    "selu": jax.nn.selu,
    "sigmoid": jax.nn.sigmoid,
    "identity": lambda x: x,
    "leakyrelu": lambda x: jax.nn.leaky_relu(x),
    "gelu": jax.nn.gelu,
}

_TRANSCENDENTAL_ACTS = ("tanh", "sigmoid", "elu", "selu", "gelu")


def _round_up(n, m):
    return -(-n // m) * m


def pick_elem_dtype():
    """bf16 elementwise on v6e/v7x (bf16 VPU/EUP); f32 on v5e and unknown chips."""
    try:
        kind = jax.devices()[0].device_kind.lower()
    except Exception:
        return jnp.float32
    if "v6" in kind or "v7" in kind:
        return jnp.bfloat16
    return jnp.float32


# ----------------------------------------------------------------------------
# Pallas kernel: one batch tile per grid step; all weights VMEM-resident.
# ----------------------------------------------------------------------------
def make_resnet_coder_kernel(num_blocks, actf_name, elem_dtype):
    act = ACTS[actf_name]

    def kernel(x_ref, w1_ref, bu_ref, wblk_ref, w2_ref, b2_ref, wl_ref, bl_ref,
               out_ref):
        def mm(h, w):
            # MXU matmul, bf16 inputs, f32 accumulation.
            return jnp.dot(h.astype(jnp.bfloat16), w,
                           preferred_element_type=jnp.float32)

        x = x_ref[...]                                     # (TILE_B, L) f32

        # conv1 + bn1 (folded) + relu — spatial length 1 => center-tap matmul.
        h = jax.nn.relu(mm(x, w1_ref[...]).astype(elem_dtype) + bu_ref[0])

        # ResNet blocks (identity shortcut: in_channels == out_channels).
        for k in range(num_blocks):
            sc = h
            a = jax.nn.relu(mm(h, wblk_ref[2 * k]).astype(elem_dtype)
                            + bu_ref[2 * k + 1])
            h = jax.nn.relu(mm(a, wblk_ref[2 * k + 1]).astype(elem_dtype)
                            + bu_ref[2 * k + 2] + sc)

        # conv2 (no BN afterwards).
        h = mm(h, w2_ref[...]).astype(elem_dtype) + b2_ref[...]

        # torch.flatten(start_dim=1) is a no-op (spatial dim == 1);
        # Dropout is the eval-mode identity.
        # linear_1 (padded to a lane-dense 128-multiple) + actf, in f32.
        y = act(mm(h, wl_ref[...]) + bl_ref[...])
        out_ref[...] = y.astype(out_ref.dtype)             # bf16 lane-dense slab

    return kernel


# ----------------------------------------------------------------------------
# Parameter setup (glue): torch-shaped raw params.
# ----------------------------------------------------------------------------
def init_params(key, args):
    L = args["block_length"] + args["block_padding"] + args["redundancy"]
    U = args["coder_units"]
    K = args["coder_kernel"]
    BL = args["block_length"]
    nb = args["coder_layers"]

    keys = iter(jax.random.split(key, 16 + 12 * nb))

    def nrm(shape, scale):
        return (scale * jax.random.normal(next(keys), shape)).astype(jnp.float32)

    def bn_init(c):
        return dict(gamma=1.0 + nrm((c,), 0.1), beta=nrm((c,), 0.1),
                    mean=nrm((c,), 0.1), var=jnp.abs(1.0 + nrm((c,), 0.1)))

    params = {
        # torch-shaped raw params (Conv1d: (O, C, K); Linear: (out, in)).
        "conv1_w": nrm((U, L, K), 0.3), "conv1_b": nrm((U,), 0.1),
        "bn1": bn_init(U),
        "blocks": [
            dict(convA_w=nrm((U, U, K), 0.3), convA_b=nrm((U,), 0.1), bnA=bn_init(U),
                 convB_w=nrm((U, U, K), 0.3), convB_b=nrm((U,), 0.1), bnB=bn_init(U))
            for _ in range(nb)
        ],
        "conv2_w": nrm((L, U, K), 0.3), "conv2_b": nrm((L,), 0.1),
        "lin_w": nrm((BL, L), 0.3), "lin_b": nrm((BL,), 0.1),
    }
    return params


def pack_kernel_params(params, args, BL_pad, elem_dtype):
    """Center-tap extraction + eval-mode BN folding + consolidated operands."""
    K = args["coder_kernel"]
    P = K // 2
    eps = 1e-5

    def center_in_out(w):            # torch (O, C, K) -> (C_in, O_out) center tap
        return jnp.transpose(w[:, :, P], (1, 0))

    def fold(w_io, b, bn):           # conv followed by eval-mode BatchNorm1d
        s = bn["gamma"] / jnp.sqrt(bn["var"] + eps)
        wf = (w_io * s[None, :]).astype(jnp.bfloat16)
        bf = ((b - bn["mean"]) * s + bn["beta"]).reshape(1, -1)
        return wf, bf

    w1, b1 = fold(center_in_out(params["conv1_w"]), params["conv1_b"], params["bn1"])

    blk_ws, blk_bs = [], [b1]
    for blk in params["blocks"]:
        wA, bA = fold(center_in_out(blk["convA_w"]), blk["convA_b"], blk["bnA"])
        wB, bB = fold(center_in_out(blk["convB_w"]), blk["convB_b"], blk["bnB"])
        blk_ws += [wA, wB]
        blk_bs += [bA, bB]

    # Consolidated slabs: one weight stack + one bias stack for all blocks.
    wblk = jnp.stack(blk_ws, axis=0)                            # (2nb, U, U) bf16
    bu = jnp.stack(blk_bs, axis=0).astype(elem_dtype)           # (2nb+1, 1, U)

    # conv2 (no BN).
    w2 = center_in_out(params["conv2_w"]).astype(jnp.bfloat16)  # (U, L)
    b2 = params["conv2_b"].reshape(1, -1).astype(elem_dtype)    # (1, L)

    # linear_1: torch (out, in) -> (in, out), padded to a lane-dense width.
    BL = params["lin_b"].shape[0]
    wl = jnp.transpose(params["lin_w"], (1, 0))
    wl = jnp.pad(wl, ((0, 0), (0, BL_pad - BL))).astype(jnp.bfloat16)      # (L, BL_pad)
    bl = jnp.pad(params["lin_b"], (0, BL_pad - BL)).reshape(1, -1)
    bl = bl.astype(jnp.float32)                                             # (1, BL_pad)

    return [w1, bu, wblk, w2, b2, wl, bl]


# ----------------------------------------------------------------------------
# Wrapper: batch-gridded pallas_call with VMEM-resident weights.
# ----------------------------------------------------------------------------
def resnet_coder_sep_forward(inputs, params, args, elem_dtype=None):
    if elem_dtype is None:
        elem_dtype = pick_elem_dtype()

    B = inputs.shape[0]
    BL = args["block_length"]
    L = BL + args["block_padding"] + args["redundancy"]
    U = args["coder_units"]
    nb = args["coder_layers"]
    assert nb >= 1, "kernel packing assumes at least one ResNet block"
    assert inputs.shape[1] == L and inputs.shape[2] == 1, (
        "ResNetCoder_sep kernel assumes (B, L_total, 1) input (spatial length 1); "
        "the center-tap conv reduction is only valid in that regime.")

    BL_pad = _round_up(BL, 128)                 # lane-dense output slab
    if B >= 2048:
        TILE_B = 2048                           # multiple of 256: fills v6e/v7x MXU rows
    else:
        TILE_B = max(8, _round_up(B, 8))        # small-batch: single tile
    B_pad = _round_up(B, TILE_B)
    grid = (B_pad // TILE_B,)

    # Input is (B, L_total, 1): Conv1d spatial length is 1, so just squeeze.
    x = inputs.reshape(B, L).astype(jnp.float32)
    if B_pad != B:
        x = jnp.pad(x, ((0, B_pad - B), (0, 0)))

    weights = pack_kernel_params(params, args, BL_pad, elem_dtype)
    kernel = make_resnet_coder_kernel(nb, args["coder_actf"], elem_dtype)

    # Weight/bias specs: full-array blocks, constant index_map -> DMA'd once,
    # VMEM-resident across all grid steps.
    def const_spec(arr):
        nd = arr.ndim
        return pl.BlockSpec(arr.shape, lambda i, _nd=nd: (0,) * _nd)

    in_specs = ([pl.BlockSpec((TILE_B, L), lambda i: (i, 0))]
                + [const_spec(w) for w in weights])
    out_specs = pl.BlockSpec((TILE_B, BL_pad), lambda i: (i, 0))

    # Advisory cost estimate for the surrounding XLA schedule.
    mm_dims = [(L, U)] + [(U, U)] * (2 * nb) + [(U, L), (L, BL_pad)]
    flops = 2 * B_pad * sum(a * b for a, b in mm_dims)
    w_bytes = sum(int(w.size) * w.dtype.itemsize for w in weights)
    bytes_accessed = int(B_pad * L * 4 + w_bytes + B_pad * BL_pad * 2)
    transcendentals = (B_pad * BL_pad
                       if args["coder_actf"] in _TRANSCENDENTAL_ACTS else 0)

    # VMEM budget: double-buffered I/O tiles + a few live activations + weights,
    # plus headroom.  Clamped so it is valid on v5e/v6e (128 MiB) and v7x (64 MiB).
    tile_io = TILE_B * (L * 4 + BL_pad * 2)
    act_bytes = 4 * TILE_B * max(U, L) * 4
    vmem_limit = 2 * tile_io + act_bytes + w_bytes + (4 << 20)
    vmem_limit = int(min(max(vmem_limit, 8 << 20), 64 << 20))

    out_pad = pl.pallas_call(
        kernel,
        out_shape=jax.ShapeDtypeStruct((B_pad, BL_pad), jnp.bfloat16),
        grid_spec=pltpu.PrefetchScalarGridSpec(
            num_scalar_prefetch=0,
            grid=grid,
            in_specs=in_specs,
            out_specs=out_specs),
        compiler_params=pltpu.CompilerParams(
            dimension_semantics=("parallel",),      # shards batch tiles on v7x dual-TC
            vmem_limit_bytes=vmem_limit),
        cost_estimate=pl.CostEstimate(flops=flops,
                                      transcendentals=transcendentals,
                                      bytes_accessed=bytes_accessed),
    )(x, *weights)

    y = out_pad[:B, :BL].astype(jnp.float32)               # drop padding
    # TODO(synk): Quantizer.apply assumed to be straight-through sign(x);
    # applied on the tiny sliced result in the wrapper.
    yq = jnp.where(y > 0.0, 1.0, jnp.where(y < 0.0, -1.0, 0.0))
    apply_quant = (args["channel"] != "continuous") or args["continuous_coder"]
    out = yq if apply_quant else y
    return out.reshape(B, BL, 1), y.reshape(B, BL, 1)


# ----------------------------------------------------------------------------
# Pure-JAX reference: real padded convs + explicit eval-mode BatchNorm, so it
# independently validates the center-tap / BN-folding math in the kernel.
# ----------------------------------------------------------------------------
def reference_forward(inputs, params, args):
    act = ACTS[args["coder_actf"]]
    B = inputs.shape[0]
    BL = args["block_length"]
    K = args["coder_kernel"]
    P = K // 2
    eps = 1e-5

    def conv(x, w, b):
        y = jax.lax.conv_general_dilated(
            x, w, window_strides=(1,), padding=[(P, P)],
            dimension_numbers=("NCH", "OIH", "NCH"))
        return y + b[None, :, None]

    def bn(x, p):
        return ((x - p["mean"][None, :, None])
                / jnp.sqrt(p["var"] + eps)[None, :, None]
                * p["gamma"][None, :, None] + p["beta"][None, :, None])

    x = inputs.astype(jnp.float32)                      # (B, L_total, 1) as NCH
    x = jax.nn.relu(bn(conv(x, params["conv1_w"], params["conv1_b"]), params["bn1"]))
    for blk in params["blocks"]:
        sc = x
        h = jax.nn.relu(bn(conv(x, blk["convA_w"], blk["convA_b"]), blk["bnA"]))
        h = bn(conv(h, blk["convB_w"], blk["convB_b"]), blk["bnB"])
        x = jax.nn.relu(h + sc)
    x = conv(x, params["conv2_w"], params["conv2_b"])
    x = x.reshape(B, -1)                                # torch.flatten(start_dim=1)
    y = act(x @ params["lin_w"].T + params["lin_b"])    # Dropout = identity (eval)
    return y.reshape(B, BL, 1)                          # pre-quantizer float output


# ----------------------------------------------------------------------------
if __name__ == "__main__":
    args = dict(
        coder_actf="tanh",
        coder_dropout=0.0,
        coder_layers=2,
        coder_units=16,
        coder_kernel=3,
        block_length=12,
        block_padding=2,
        redundancy=2,
        channel="awgn",
        continuous_coder=False,
    )
    B = 2
    L_total = args["block_length"] + args["block_padding"] + args["redundancy"]  # 16

    key = jax.random.PRNGKey(0)
    kx, kp = jax.random.split(key)
    inputs = jax.random.normal(kx, (B, L_total, 1), dtype=jnp.float32)
    params = init_params(kp, args)

    elem_dtype = pick_elem_dtype()
    out, out_float = resnet_coder_sep_forward(inputs, params, args,
                                              elem_dtype=elem_dtype)
    out = jax.block_until_ready(out)
    out_float = jax.block_until_ready(out_float)

    assert out.shape == (B, args["block_length"], 1), out.shape

    ref_float = reference_forward(inputs, params, args)
    # Tolerance: bf16 matmul weights/inputs (+ bf16 output slab) always; wider
    # when the bf16 elementwise path is active (v6e/v7x).
    if elem_dtype == jnp.bfloat16:
        atol, rtol = 6e-2, 3e-2
    else:
        atol, rtol = 2e-2, 2e-2
    np.testing.assert_allclose(np.asarray(out_float), np.asarray(ref_float),
                               atol=atol, rtol=rtol)
    # Quantized (module) output is sign-valued.
    assert set(np.unique(np.asarray(out))).issubset({-1.0, 0.0, 1.0})

    print("KERNEL_OK")
</pallas_src>

<mosaic_0001>
module attributes {stable_mosaic.version = 11 : i64} {
  func.func @kernel(%arg0: i32, %arg1: memref<8x16xf32, #tpu.memory_space<vmem>>, %arg2: memref<16x16xbf16, #tpu.memory_space<vmem>>, %arg3: memref<5x1x16xf32, #tpu.memory_space<vmem>>, %arg4: memref<4x16x16xbf16, #tpu.memory_space<vmem>>, %arg5: memref<16x16xbf16, #tpu.memory_space<vmem>>, %arg6: memref<1x16xf32, #tpu.memory_space<vmem>>, %arg7: memref<16x128xbf16, #tpu.memory_space<vmem>>, %arg8: memref<1x128xf32, #tpu.memory_space<vmem>>, %arg9: memref<8x128xbf16, #tpu.memory_space<vmem>>) attributes {dimension_semantics = [#tpu.dimension_semantics<parallel>], iteration_bounds = array<i64: 1>, scalar_prefetch = 0 : i64, scratch_operands = 0 : i64, tpu.core_type = #tpu.core_type<tc>, window_params = [{transform_indices = @transform_0, window_bounds = array<i64: 8, 16>}, {pipeline_mode = #tpu.pipeline_mode<synchronous>, transform_indices = @transform_1, window_bounds = array<i64: 16, 16>}, {pipeline_mode = #tpu.pipeline_mode<synchronous>, transform_indices = @transform_2, window_bounds = array<i64: 5, 1, 16>}, {pipeline_mode = #tpu.pipeline_mode<synchronous>, transform_indices = @transform_3, window_bounds = array<i64: 4, 16, 16>}, {pipeline_mode = #tpu.pipeline_mode<synchronous>, transform_indices = @transform_4, window_bounds = array<i64: 16, 16>}, {pipeline_mode = #tpu.pipeline_mode<synchronous>, transform_indices = @transform_5, window_bounds = array<i64: 1, 16>}, {pipeline_mode = #tpu.pipeline_mode<synchronous>, transform_indices = @transform_6, window_bounds = array<i64: 16, 128>}, {pipeline_mode = #tpu.pipeline_mode<synchronous>, transform_indices = @transform_7, window_bounds = array<i64: 1, 128>}, {transform_indices = @transform_8, window_bounds = array<i64: 8, 128>}]} {
    %c0 = arith.constant 0 : index
    %c0_0 = arith.constant 0 : index
    %0 = vector.load %arg1[%c0, %c0_0] : memref<8x16xf32, #tpu.memory_space<vmem>>, vector<8x16xf32>
    %c0_1 = arith.constant 0 : index
    %c0_2 = arith.constant 0 : index
    %1 = vector.load %arg2[%c0_1, %c0_2] : memref<16x16xbf16, #tpu.memory_space<vmem>>, vector<16x16xbf16>
    %2 = arith.truncf %0 : vector<8x16xf32> to vector<8x16xbf16>
    %cst = arith.constant dense<0.000000e+00> : vector<8x16xf32>
    %3 = tpu.matmul %2, %1, %cst {dimension_numbers = #tpu.dot_dimension_numbers<[1], [0], [0], [1], [0, 0, 1, 1], [], []>} : vector<8x16xbf16>, vector<16x16xbf16>, vector<8x16xf32> -> vector<8x16xf32>
    %c0_3 = arith.constant 0 : index
    %c0_4 = arith.constant 0 : index
    %c0_5 = arith.constant 0 : index
    %4 = vector.load %arg3[%c0_3, %c0_4, %c0_5] : memref<5x1x16xf32, #tpu.memory_space<vmem>>, vector<1x1x16xf32>
    %5 = vector.shape_cast %4 : vector<1x1x16xf32> to vector<1x16xf32>
    %6 = vector.broadcast %5 : vector<1x16xf32> to vector<8x16xf32>
    %7 = arith.addf %3, %6 : vector<8x16xf32>
    %cst_6 = arith.constant 0.000000e+00 : f32
    %8 = vector.broadcast %cst_6 : f32 to vector<8x16xf32>
    %9 = arith.maximumf %7, %8 : vector<8x16xf32>
    %c0_7 = arith.constant 0 : index
    %c0_8 = arith.constant 0 : index
    %c0_9 = arith.constant 0 : index
    %10 = vector.load %arg4[%c0_7, %c0_8, %c0_9] : memref<4x16x16xbf16, #tpu.memory_space<vmem>>, vector<1x16x16xbf16>
    %11 = vector.shape_cast %10 : vector<1x16x16xbf16> to vector<16x16xbf16>
    %12 = arith.truncf %9 : vector<8x16xf32> to vector<8x16xbf16>
    %cst_10 = arith.constant dense<0.000000e+00> : vector<8x16xf32>
    %13 = tpu.matmul %12, %11, %cst_10 {dimension_numbers = #tpu.dot_dimension_numbers<[1], [0], [0], [1], [0, 0, 1, 1], [], []>} : vector<8x16xbf16>, vector<16x16xbf16>, vector<8x16xf32> -> vector<8x16xf32>
    %c1 = arith.constant 1 : index
    %c0_11 = arith.constant 0 : index
    %c0_12 = arith.constant 0 : index
    %14 = vector.load %arg3[%c1, %c0_11, %c0_12] : memref<5x1x16xf32, #tpu.memory_space<vmem>>, vector<1x1x16xf32>
    %15 = vector.shape_cast %14 : vector<1x1x16xf32> to vector<1x16xf32>
    %16 = vector.broadcast %15 : vector<1x16xf32> to vector<8x16xf32>
    %17 = arith.addf %13, %16 : vector<8x16xf32>
    %cst_13 = arith.constant 0.000000e+00 : f32
    %18 = vector.broadcast %cst_13 : f32 to vector<8x16xf32>
    %19 = arith.maximumf %17, %18 : vector<8x16xf32>
    %c1_14 = arith.constant 1 : index
    %c0_15 = arith.constant 0 : index
    %c0_16 = arith.constant 0 : index
    %20 = vector.load %arg4[%c1_14, %c0_15, %c0_16] : memref<4x16x16xbf16, #tpu.memory_space<vmem>>, vector<1x16x16xbf16>
    %21 = vector.shape_cast %20 : vector<1x16x16xbf16> to vector<16x16xbf16>
    %22 = arith.truncf %19 : vector<8x16xf32> to vector<8x16xbf16>
    %cst_17 = arith.constant dense<0.000000e+00> : vector<8x16xf32>
    %23 = tpu.matmul %22, %21, %cst_17 {dimension_numbers = #tpu.dot_dimension_numbers<[1], [0], [0], [1], [0, 0, 1, 1], [], []>} : vector<8x16xbf16>, vector<16x16xbf16>, vector<8x16xf32> -> vector<8x16xf32>
    %c2 = arith.constant 2 : index
    %c0_18 = arith.constant 0 : index
    %c0_19 = arith.constant 0 : index
    %24 = vector.load %arg3[%c2, %c0_18, %c0_19] : memref<5x1x16xf32, #tpu.memory_space<vmem>>, vector<1x1x16xf32>
    %25 = vector.shape_cast %24 : vector<1x1x16xf32> to vector<1x16xf32>
    %26 = vector.broadcast %25 : vector<1x16xf32> to vector<8x16xf32>
    %27 = arith.addf %23, %26 : vector<8x16xf32>
    %28 = arith.addf %27, %9 : vector<8x16xf32>
    %cst_20 = arith.constant 0.000000e+00 : f32
    %29 = vector.broadcast %cst_20 : f32 to vector<8x16xf32>
    %30 = arith.maximumf %28, %29 : vector<8x16xf32>
    %c2_21 = arith.constant 2 : index
    %c0_22 = arith.constant 0 : index
    %c0_23 = arith.constant 0 : index
    %31 = vector.load %arg4[%c2_21, %c0_22, %c0_23] : memref<4x16x16xbf16, #tpu.memory_space<vmem>>, vector<1x16x16xbf16>
    %32 = vector.shape_cast %31 : vector<1x16x16xbf16> to vector<16x16xbf16>
    %33 = arith.truncf %30 : vector<8x16xf32> to vector<8x16xbf16>
    %cst_24 = arith.constant dense<0.000000e+00> : vector<8x16xf32>
    %34 = tpu.matmul %33, %32, %cst_24 {dimension_numbers = #tpu.dot_dimension_numbers<[1], [0], [0], [1], [0, 0, 1, 1], [], []>} : vector<8x16xbf16>, vector<16x16xbf16>, vector<8x16xf32> -> vector<8x16xf32>
    %c3 = arith.constant 3 : index
    %c0_25 = arith.constant 0 : index
    %c0_26 = arith.constant 0 : index
    %35 = vector.load %arg3[%c3, %c0_25, %c0_26] : memref<5x1x16xf32, #tpu.memory_space<vmem>>, vector<1x1x16xf32>
    %36 = vector.shape_cast %35 : vector<1x1x16xf32> to vector<1x16xf32>
    %37 = vector.broadcast %36 : vector<1x16xf32> to vector<8x16xf32>
    %38 = arith.addf %34, %37 : vector<8x16xf32>
    %cst_27 = arith.constant 0.000000e+00 : f32
    %39 = vector.broadcast %cst_27 : f32 to vector<8x16xf32>
    %40 = arith.maximumf %38, %39 : vector<8x16xf32>
    %c3_28 = arith.constant 3 : index
    %c0_29 = arith.constant 0 : index
    %c0_30 = arith.constant 0 : index
    %41 = vector.load %arg4[%c3_28, %c0_29, %c0_30] : memref<4x16x16xbf16, #tpu.memory_space<vmem>>, vector<1x16x16xbf16>
    %42 = vector.shape_cast %41 : vector<1x16x16xbf16> to vector<16x16xbf16>
    %43 = arith.truncf %40 : vector<8x16xf32> to vector<8x16xbf16>
    %cst_31 = arith.constant dense<0.000000e+00> : vector<8x16xf32>
    %44 = tpu.matmul %43, %42, %cst_31 {dimension_numbers = #tpu.dot_dimension_numbers<[1], [0], [0], [1], [0, 0, 1, 1], [], []>} : vector<8x16xbf16>, vector<16x16xbf16>, vector<8x16xf32> -> vector<8x16xf32>
    %c4 = arith.constant 4 : index
    %c0_32 = arith.constant 0 : index
    %c0_33 = arith.constant 0 : index
    %45 = vector.load %arg3[%c4, %c0_32, %c0_33] : memref<5x1x16xf32, #tpu.memory_space<vmem>>, vector<1x1x16xf32>
    %46 = vector.shape_cast %45 : vector<1x1x16xf32> to vector<1x16xf32>
    %47 = vector.broadcast %46 : vector<1x16xf32> to vector<8x16xf32>
    %48 = arith.addf %44, %47 : vector<8x16xf32>
    %49 = arith.addf %48, %30 : vector<8x16xf32>
    %cst_34 = arith.constant 0.000000e+00 : f32
    %50 = vector.broadcast %cst_34 : f32 to vector<8x16xf32>
    %51 = arith.maximumf %49, %50 : vector<8x16xf32>
    %c0_35 = arith.constant 0 : index
    %c0_36 = arith.constant 0 : index
    %52 = vector.load %arg5[%c0_35, %c0_36] : memref<16x16xbf16, #tpu.memory_space<vmem>>, vector<16x16xbf16>
    %53 = arith.truncf %51 : vector<8x16xf32> to vector<8x16xbf16>
    %cst_37 = arith.constant dense<0.000000e+00> : vector<8x16xf32>
    %54 = tpu.matmul %53, %52, %cst_37 {dimension_numbers = #tpu.dot_dimension_numbers<[1], [0], [0], [1], [0, 0, 1, 1], [], []>} : vector<8x16xbf16>, vector<16x16xbf16>, vector<8x16xf32> -> vector<8x16xf32>
    %c0_38 = arith.constant 0 : index
    %c0_39 = arith.constant 0 : index
    %55 = vector.load %arg6[%c0_38, %c0_39] : memref<1x16xf32, #tpu.memory_space<vmem>>, vector<1x16xf32>
    %56 = vector.broadcast %55 : vector<1x16xf32> to vector<8x16xf32>
    %57 = arith.addf %54, %56 : vector<8x16xf32>
    %c0_40 = arith.constant 0 : index
    %c0_41 = arith.constant 0 : index
    %58 = vector.load %arg7[%c0_40, %c0_41] : memref<16x128xbf16, #tpu.memory_space<vmem>>, vector<16x128xbf16>
    %59 = arith.truncf %57 : vector<8x16xf32> to vector<8x16xbf16>
    %cst_42 = arith.constant dense<0.000000e+00> : vector<8x128xf32>
    %60 = tpu.matmul %59, %58, %cst_42 {dimension_numbers = #tpu.dot_dimension_numbers<[1], [0], [0], [1], [0, 0, 1, 1], [], []>} : vector<8x16xbf16>, vector<16x128xbf16>, vector<8x128xf32> -> vector<8x128xf32>
    %c0_43 = arith.constant 0 : index
    %c0_44 = arith.constant 0 : index
    %61 = vector.load %arg8[%c0_43, %c0_44] : memref<1x128xf32, #tpu.memory_space<vmem>>, vector<1x128xf32>
    %62 = vector.broadcast %61 : vector<1x128xf32> to vector<8x128xf32>
    %63 = arith.addf %60, %62 : vector<8x128xf32>
    %64 = math.tanh %63 : vector<8x128xf32>
    %65 = arith.truncf %64 : vector<8x128xf32> to vector<8x128xbf16>
    %c0_45 = arith.constant 0 : index
    %c0_46 = arith.constant 0 : index
    %66 = vector.load %arg9[%c0_45, %c0_46] : memref<8x128xbf16, #tpu.memory_space<vmem>>, vector<8x128xbf16>
    tpu.vector_store %arg9[%c0_45, %c0_46], %65 {strides = array<i32>} : memref<8x128xbf16, #tpu.memory_space<vmem>>, vector<8x128xbf16>,
    return
  }
  func.func @transform_0(%arg0: i32) -> (i32, i32) {
    %c0_i32 = arith.constant 0 : i32
    %c0_i32_0 = arith.constant 0 : i32
    return %arg0, %c0_i32 : i32, i32
  }
  func.func @transform_1(%arg0: i32) -> (i32, i32) {
    %c0_i32 = arith.constant 0 : i32
    %c0_i32_0 = arith.constant 0 : i32
    %c0_i32_1 = arith.constant 0 : i32
    return %c0_i32, %c0_i32_0 : i32, i32
  }
  func.func @transform_2(%arg0: i32) -> (i32, i32, i32) {
    %c0_i32 = arith.constant 0 : i32
    %c0_i32_0 = arith.constant 0 : i32
    %c0_i32_1 = arith.constant 0 : i32
    %c0_i32_2 = arith.constant 0 : i32
    return %c0_i32, %c0_i32_0, %c0_i32_1 : i32, i32, i32
  }
  func.func @transform_3(%arg0: i32) -> (i32, i32, i32) {
    %c0_i32 = arith.constant 0 : i32
    %c0_i32_0 = arith.constant 0 : i32
    %c0_i32_1 = arith.constant 0 : i32
    %c0_i32_2 = arith.constant 0 : i32
    return %c0_i32, %c0_i32_0, %c0_i32_1 : i32, i32, i32
  }
  func.func @transform_4(%arg0: i32) -> (i32, i32) {
    %c0_i32 = arith.constant 0 : i32
    %c0_i32_0 = arith.constant 0 : i32
    %c0_i32_1 = arith.constant 0 : i32
    return %c0_i32, %c0_i32_0 : i32, i32
  }
  func.func @transform_5(%arg0: i32) -> (i32, i32) {
    %c0_i32 = arith.constant 0 : i32
    %c0_i32_0 = arith.constant 0 : i32
    %c0_i32_1 = arith.constant 0 : i32
    return %c0_i32, %c0_i32_0 : i32, i32
  }
  func.func @transform_6(%arg0: i32) -> (i32, i32) {
    %c0_i32 = arith.constant 0 : i32
    %c0_i32_0 = arith.constant 0 : i32
    %c0_i32_1 = arith.constant 0 : i32
    return %c0_i32, %c0_i32_0 : i32, i32
  }
  func.func @transform_7(%arg0: i32) -> (i32, i32) {
    %c0_i32 = arith.constant 0 : i32
    %c0_i32_0 = arith.constant 0 : i32
    %c0_i32_1 = arith.constant 0 : i32
    return %c0_i32, %c0_i32_0 : i32, i32
  }
  func.func @transform_8(%arg0: i32) -> (i32, i32) {
    %c0_i32 = arith.constant 0 : i32
    %c0_i32_0 = arith.constant 0 : i32
    return %arg0, %c0_i32 : i32, i32
  }
}

</mosaic_0001>

<bundles_post_ra>
// kernel: tpu_custom_call.1
= control target key start
LH: loop header
LB: loop body
LE: loop exit
PB: predicated region body
PF: predicated region fallthrough
CT: control target
= control target key end

     0   :  { %13 = vsyncpa [#allocation3], 0  ;;  %s910_s0 = inlined_call_operand.hbm [shape: f32[8,16], index: 0, kind: input, shape index: {}]   ;;  %s911_s1 = inlined_call_operand.hbm [shape: bf16[16,16], index: 1, kind: input, shape index: {}]   ;;  %s912_s2 = inlined_call_operand.hbm [shape: f32[5,1,16], index: 2, kind: input, shape index: {}]   ;;  %s913_s3 = inlined_call_operand.hbm [shape: bf16[4,16,16], index: 3, kind: input, shape index: {}]   ;;  %s914_s4 = inlined_call_operand.vmem [shape: bf16[16,16], index: 4, kind: input, shape index: {}]   ;;  %s915_s5 = inlined_call_operand.vmem [shape: f32[1,16], index: 5, kind: input, shape index: {}]   ;;  %s916_s6 = inlined_call_operand.vmem [shape: bf16[16,128], index: 6, kind: input, shape index: {}]   ;;  %s917_s7 = inlined_call_operand.vmem [shape: f32[1,128], index: 7, kind: input, shape index: {}]   ;;  %s918_s8 = inlined_call_operand.hbm [shape: bf16[8,128], index: 8, kind: output, shape index: {}]  }
   0x1   :  { %14 = vsyncpa [#allocation6], 0 }
   0x2   :  { %15 = vsyncpa [#allocation9], 0 }
   0x3   :  { %16 = vsyncpa [#allocation4], 0  ;;  %s748_s27 = smov [#allocation5]   ;;  %s630_s9 = scalar_lea.hbm %s911_s1, 128 }
   0x4   :  { %s32_s28 = sshll.u32 %s748_s27, 4  ;;  %p631_p0 = scmp.ne.s32.totalorder %s911_s1, %s630_s9  ;;  %s33_s28 = int_to_ptr.vmem [resolvable:$true] %s32_s28 }
   0x5   :  { %p634_p1 = scmp.lt.u32.totalorder %s630_s9, %s911_s1 }
   0x7   :  { %p636_p2 = pnand %p634_p1, %p631_p0 }
   0x9   :  { %639 = shalt.err (!%p636_p2)
}
   0xa   :  { %s640_s14 = scalar_lea.vmem %s33_s28, 128  ;;  %p645_p4 = scmp.lt.s32.totalorder %s33_s28, %s33_s28 }
   0xb   :  { %p641_p3 = scmp.ne.s32.totalorder %s33_s28, %s640_s14  ;;  %p646_p5 = scmp.lt.s32.totalorder %s640_s14, %s640_s14 }
   0xd   :  { %p647_p6 = por %p646_p5, %p645_p4 }
   0xf   :  { %p648_p7 = pnand %p647_p6, %p641_p3 }
  0x11   :  { %651 = shalt.err (!%p648_p7)
}
  0x12   :  { %s749_s15 = smov 64   ;;  %s750_s16 = smov 4  }
  0x13   :  { %38 = dma.hbm_to_vmem [thread:$0]  %s911_s1, 128, %s33_s28, [#allocation6], %s749_s15, %s749_s15, %s750_s16  }
  0x14   :  { %s751_s19 = smov [#allocation2]   ;;  %s752_s21 = smov [#allocation7]  }
  0x15   :  { %s23_s20 = sshll.u32 %s751_s19, 4  ;;  %s44_s22 = sshll.u32 %s752_s21, 4  ;;  %s24_s20 = int_to_ptr.vmem [resolvable:$true] %s23_s20  ;;  %s45_s22 = int_to_ptr.vmem [resolvable:$true] %s44_s22 }
  0x16   :  { %s652_s25 = scalar_lea.hbm %s910_s0, 128 }
  0x17   :  { %p653_p8 = scmp.ne.s32.totalorder %s910_s0, %s652_s25  ;;  %p656_p9 = scmp.lt.u32.totalorder %s652_s25, %s910_s0 }
  0x19   :  { %p658_p10 = pnand %p656_p9, %p653_p8 }
  0x1b   :  { %661 = shalt.err (!%p658_p10)
}
  0x1c   :  { %s662_s1 = scalar_lea.vmem %s24_s20, 128  ;;  %p667_p12 = scmp.lt.s32.totalorder %s24_s20, %s24_s20 }
  0x1d   :  { %p663_p11 = scmp.ne.s32.totalorder %s24_s20, %s662_s1  ;;  %p668_p13 = scmp.lt.s32.totalorder %s662_s1, %s662_s1 }
  0x1f   :  { %p669_p0 = por %p668_p13, %p667_p12 }
  0x21   :  { %p670_p1 = pnand %p669_p0, %p663_p11 }
  0x23   :  { %673 = shalt.err (!%p670_p1)
}
  0x24   :  { %26 = dma.hbm_to_vmem [thread:$0]  %s910_s0, 128, %s24_s20, [#allocation3]  }
  0x25   :  { %s674_s12 = scalar_lea.hbm %s912_s2, 80 }
  0x26   :  { %p675_p2 = scmp.ne.s32.totalorder %s912_s2, %s674_s12  ;;  %p678_p3 = scmp.lt.u32.totalorder %s674_s12, %s912_s2 }
  0x28   :  { %p680_p4 = pnand %p678_p3, %p675_p2 }
  0x2a   :  { %683 = shalt.err (!%p680_p4)
}
  0x2b   :  { %s684_s19 = scalar_lea.vmem %s45_s22, 80  ;;  %s688_s21 = scalar_lea.vmem %s45_s22, 96 }
  0x2c   :  { %p685_p5 = scmp.ne.s32.totalorder %s45_s22, %s684_s19  ;;  %p689_p6 = scmp.lt.s32.totalorder %s45_s22, %s45_s22 }
  0x2d   :  { %p690_p7 = scmp.lt.s32.totalorder %s688_s21, %s684_s19 }
  0x2f   :  { %p691_p8 = por %p690_p7, %p689_p6 }
  0x31   :  { %p692_p9 = pnand %p691_p8, %p685_p5 }
  0x33   :  { %695 = shalt.err (!%p692_p9)
}
  0x34   :  { %s753_s0 = smov 16   ;;  %s754_s20 = smov 1  }
  0x35   :  { %50 = dma.hbm_to_vmem [thread:$0]  %s912_s2, 80, %s45_s22, [#allocation6], %s753_s0, %s753_s0, %s754_s20  }
  0x36   :  { %s755_s25 = smov [#allocation8]   ;;  %s696_s30 = scalar_lea.hbm %s913_s3, 512 }
  0x37   :  { %s56_s26 = sshll.u32 %s755_s25, 4  ;;  %p697_p10 = scmp.ne.s32.totalorder %s913_s3, %s696_s30  ;;  %s57_s26 = int_to_ptr.vmem [resolvable:$true] %s56_s26 }
  0x38   :  { %p700_p11 = scmp.lt.u32.totalorder %s696_s30, %s913_s3 }
  0x3a   :  { %p702_p12 = pnand %p700_p11, %p697_p10 }
  0x3c   :  { %705 = shalt.err (!%p702_p12)
}
  0x3d   :  { %s706_s11 = scalar_lea.vmem %s57_s26, 512  ;;  %p711_p0 = scmp.lt.s32.totalorder %s57_s26, %s57_s26 }
  0x3e   :  { %p707_p13 = scmp.ne.s32.totalorder %s57_s26, %s706_s11  ;;  %p712_p1 = scmp.lt.s32.totalorder %s706_s11, %s706_s11 }
  0x40   :  { %p713_p2 = por %p712_p1, %p711_p0 }
  0x42   :  { %p714_p3 = pnand %p713_p2, %p707_p13 }
  0x44   :  { %717 = shalt.err (!%p714_p3)
}
  0x45   :  { %62 = dma.hbm_to_vmem [thread:$0]  %s913_s3, 512, %s57_s26, [#allocation9], %s749_s15, %s749_s15, %s750_s16  }
  0x46   :  { %740 = dma.done.wait [#allocation3], 128  }
  0x47   :  { %741 = vsyncadd [#allocation3], 4294967168 }
  0x48   :  { %742 = dma.done.wait [#allocation6], 208  }
  0x49   :  { %743 = vsyncadd [#allocation6], 4294967088 }
  0x4a   :  { %744 = dma.done.wait [#allocation9], 512  }
  0x4b   :  { %745 = vsyncadd [#allocation9], 4294966784  ;;  %v756_v0 = vmov 0.0   ;;  %vm757_vm0 = vmmov 0   ;;  %v621_v1 = vld [vmem:[#allocation5] sm:$0xff]   ;;  %v84_v2 = vld [vmem:[#allocation2] sm:$0xff] }
  0x4c   :  { %568 = vmatprep.subr.bf16.mxu0 %v756_v0  ;;  %570 = vmatprep.mubr.msk.bf16.mxu0 %vm757_vm0, %v756_v0  ;;  %vm101_vm1 = vcmask 130048   ;;  %v87_v3 = vpack.c.bf16 %v84_v2, %v84_v2  ;;  %v622_v4 = vld [vmem:[#allocation8] sm:$0xff]   ;;  %v623_v5 = vld [vmem:[#allocation8 + $0x8] sm:$0xff]   ;;  %v533_v6 = vld [vmem:[#allocation7] ss:$0 sm:$0xff]  ;;  %s758_s17 = smov [#allocation10]  }
  0x4d   :  { %574 = vmatprep.subr.bf16.mxu1 %v756_v0  ;;  %576 = vmatprep.mubr.msk.bf16.mxu1 %vm757_vm0, %v756_v0  ;;  %v536_v14 = vld [vmem:[#allocation7 + $0x1] ss:$0 sm:$0xff]  ;;  %v624_v22 = vld [vmem:[#allocation8 + $0x10] sm:$0xff]   ;;  %v539_v24 = vld [vmem:[#allocation7 + $0x2] ss:$0 sm:$0xff] }
  0x4e   :  { %569 = vmatpush3.bf16.msra.mxu0 %v621_v1  ;;  %575 = vmatpush3.bf16.msra.mxu1 %v622_v4  ;;  %v625_v23 = vld [vmem:[#allocation8 + $0x18] sm:$0xff]   ;;  %v626_v41 = vld [vmem:[%s914_s4] sm:$0xff]  }
  0x4f   :  { %580 = vmatprep.subr.bf16.mxu0 %v756_v0  ;;  %586 = vmatprep.subr.bf16.mxu1 %v756_v0  ;;  %v542_v33 = vld [vmem:[#allocation7 + $0x3] ss:$0 sm:$0xff]  ;;  %v627_v42 = vld [vmem:[%s916_s6] sm:$0xff]   ;;  %v545_v43 = vld [vmem:[#allocation7 + $0x4] ss:$0 sm:$0xff] }
  0x50   :  { %v548_v52 = vld [vmem:[%s915_s5] ss:$0 sm:$0xff]  ;;  %s522_s5 = sshll.u32 %s758_s17, 4  ;;  %s523_s5 = int_to_ptr.vmem [resolvable:$true] %s522_s5 }
  0x51   :  { %571 = vmatmul.mubr.msk.bf16.vlgmr.msra.gmra.mrb[0].mxu0 %vm101_vm1, %v87_v3  ;;  %v551_v59 = vld [vmem:[%s917_s7] ss:$0 sm:$0xff]  ;;  %s718_s18 = scalar_lea.vmem %s523_s5, 64  ;;  %p723_p5 = scmp.lt.s32.totalorder %s523_s5, %s523_s5 }
  0x52   :  { %582 = vmatprep.mubr.msk.bf16.mxu0 %vm757_vm0, %v756_v0  ;;  %581 = vmatpush3.bf16.msra.mxu0 %v623_v5  ;;  %p719_p4 = scmp.ne.s32.totalorder %s523_s5, %s718_s18  ;;  %p724_p6 = scmp.lt.s32.totalorder %s718_s18, %s718_s18 }
  0x53   :  { %592 = vmatprep.subr.bf16.mxu0 %v756_v0 }
  0x54   :  { %p725_p7 = por %p724_p6, %p723_p5 }
  0x56   :  { %p726_p8 = pnand %p725_p7, %p719_p4 }
 0x124   :  { %v139_v7 = vpop.f32.mrb[0].mxu0 }
 0x125   :  { %v140_v8 = vadd.f32 %v533_v6, %v139_v7  ;;  %v572_v9 = vpop.f32.mrb[1].mxu0 }
 0x126   :  { %v142_v10 = vpop.f32.mrb[2].mxu0 }
 0x127   :  { %v145_v11 = vmax.f32 %v140_v8, 0.0  ;;  %v573_v12 = vpop.f32.mrb[3].mxu0 }
 0x129   :  { %v148_v13 = vpack.c.bf16 %v145_v11, %v145_v11 }
 0x12b   :  { %577 = vmatmul.mubr.msk.bf16.vlgmr.msra.gmra.mrb[0].mxu1 %vm101_vm1, %v148_v13 }
 0x12c   :  { %588 = vmatprep.mubr.msk.bf16.mxu1 %vm757_vm0, %v756_v0  ;;  %587 = vmatpush3.bf16.msra.mxu1 %v624_v22 }
 0x12d   :  { %598 = vmatprep.subr.bf16.mxu1 %v756_v0 }
 0x1fe   :  { %v200_v15 = vpop.f32.mrb[0].mxu1 }
 0x1ff   :  { %v201_v16 = vadd.f32 %v536_v14, %v200_v15  ;;  %v578_v17 = vpop.f32.mrb[1].mxu1 }
 0x200   :  { %v203_v18 = vpop.f32.mrb[2].mxu1 }
 0x201   :  { %v206_v19 = vmax.f32 %v201_v16, 0.0  ;;  %v579_v20 = vpop.f32.mrb[3].mxu1 }
 0x203   :  { %v210_v21 = vpack.c.bf16 %v206_v19, %v206_v19 }
 0x205   :  { %583 = vmatmul.mubr.msk.bf16.vlgmr.msra.gmra.mrb[4].mxu0 %vm101_vm1, %v210_v21 }
 0x206   :  { %594 = vmatprep.mubr.msk.bf16.mxu0 %vm757_vm0, %v756_v0  ;;  %593 = vmatpush3.bf16.msra.mxu0 %v625_v23 }
 0x207   :  { %604 = vmatprep.subr.bf16.mxu0 %v756_v0 }
 0x2d8   :  { %v262_v25 = vpop.f32.mrb[4].mxu0 }
 0x2d9   :  { %v263_v26 = vadd.f32 %v539_v24, %v262_v25  ;;  %v584_v27 = vpop.f32.mrb[5].mxu0 }
 0x2da   :  { %v265_v28 = vpop.f32.mrb[6].mxu0 }
 0x2db   :  { %v268_v29 = vadd.f32 %v263_v26, %v145_v11  ;;  %v585_v30 = vpop.f32.mrb[7].mxu0 }
 0x2dd   :  { %v269_v31 = vmax.f32 %v268_v29, 0.0 }
 0x2df   :  { %v273_v32 = vpack.c.bf16 %v269_v31, %v269_v31 }
 0x2e1   :  { %589 = vmatmul.mubr.msk.bf16.vlgmr.msra.gmra.mrb[4].mxu1 %vm101_vm1, %v273_v32 }
 0x2e2   :  { %600 = vmatprep.mubr.msk.bf16.mxu1 %vm757_vm0, %v756_v0  ;;  %599 = vmatpush3.bf16.msra.mxu1 %v626_v41 }
 0x3b4   :  { %v325_v34 = vpop.f32.mrb[4].mxu1 }
 0x3b5   :  { %v326_v35 = vadd.f32 %v542_v33, %v325_v34  ;;  %v590_v36 = vpop.f32.mrb[5].mxu1 }
 0x3b6   :  { %v328_v37 = vpop.f32.mrb[6].mxu1 }
 0x3b7   :  { %v331_v38 = vmax.f32 %v326_v35, 0.0  ;;  %v591_v39 = vpop.f32.mrb[7].mxu1 }
 0x3b9   :  { %v335_v40 = vpack.c.bf16 %v331_v38, %v331_v38 }
 0x3bb   :  { %595 = vmatmul.mubr.msk.bf16.vlgmr.msra.gmra.mrb[8].mxu0 %vm101_vm1, %v335_v40 }
 0x3bc   :  { %606 = vmatprep.mubr.msk.bf16.mxu0 %vm757_vm0, %v756_v0  ;;  %605 = vmatpush3.bf16.msra.mxu0 %v627_v42 }
 0x48e   :  { %v387_v44 = vpop.f32.mrb[8].mxu0 }
 0x48f   :  { %v388_v45 = vadd.f32 %v545_v43, %v387_v44  ;;  %v596_v46 = vpop.f32.mrb[9].mxu0 }
 0x490   :  { %v390_v47 = vpop.f32.mrb[10].mxu0 }
 0x491   :  { %v393_v48 = vadd.f32 %v388_v45, %v269_v31  ;;  %v597_v49 = vpop.f32.mrb[11].mxu0 }
 0x493   :  { %v394_v50 = vmax.f32 %v393_v48, 0.0 }
 0x495   :  { %v397_v51 = vpack.c.bf16 %v394_v50, %v394_v50 }
 0x497   :  { %601 = vmatmul.mubr.msk.bf16.vlgmr.msra.gmra.mrb[8].mxu1 %vm101_vm1, %v397_v51 }
 0x56a   :  { %v448_v53 = vpop.f32.mrb[8].mxu1 }
 0x56b   :  { %v449_v54 = vadd.f32 %v548_v52, %v448_v53  ;;  %v602_v55 = vpop.f32.mrb[9].mxu1 }
 0x56c   :  { %v451_v56 = vpop.f32.mrb[10].mxu1 }
 0x56d   :  { %v456_v57 = vpack.c.bf16 %v449_v54, %v449_v54  ;;  %v603_v58 = vpop.f32.mrb[11].mxu1 }
 0x56f   :  { %607 = vmatmul.mubr.msk.bf16.vlgmr.msra.gmra.mrb[12].mxu0 %vm101_vm1, %v456_v57 }
 0x642   :  { %v507_v60 = vpop.f32.mrb[12].mxu0 }
 0x643   :  { %v508_v61 = vadd.f32 %v551_v59, %v507_v60  ;;  %v608_v62 = vpop.f32.mrb[13].mxu0 }
 0x644   :  { %v510_v63 = vpop.f32.mrb[14].mxu0 }
 0x645   :  { %628 = vtanh.f32 %v508_v61  ;;  %v609_v0 = vpop.f32.mrb[15].mxu0 }
 0x64f   :  { %v629_v1 = vpop.eup %628 }
 0x650   :  { %v514_v2 = vpack.c.bf16 %v629_v1, %v629_v1 }
 0x652   :  { %515 = vst [vmem:[#allocation10] sm:$0xf] %v514_v2 }
 0x653   :  { %729 = shalt.err (!%p726_p8)
}
 0x654   :  { %s730_s21 = scalar_lea.hbm %s918_s8, 64 }
 0x655   :  { %p731_p9 = scmp.ne.s32.totalorder %s918_s8, %s730_s21  ;;  %p734_p10 = scmp.lt.u32.totalorder %s730_s21, %s918_s8 }
 0x657   :  { %p736_p11 = pnand %p734_p10, %p731_p9 }
 0x659   :  { %739 = shalt.err (!%p736_p11)
}
 0x65a   :  { %525 = dma.vmem_to_hbm [thread:$0]  %s523_s5, 64, %s918_s8, [#allocation4]  }
 0x65b   :  { %746 = dma.done.wait [#allocation4], 64  }
 0x65c   :  { %747 = vsyncadd [#allocation4], 4294967232 }
 0x65d   :  { %529 = vsyncpa [#allocation3], 1 }
 0x65e   :  { %530 = vsyncpa [#allocation6], 1 }
 0x65f   :  { %531 = vsyncpa [#allocation9], 1 }
 0x660   :  { %532 = vsyncpa [#allocation4], 1 }

</bundles_post_ra>
